<compile_context>
chip_gen: v5e
topology: v5e:2x2
jax: 0.10.0
libtpu: 0.0.40
codegen_flags: <defaults>
</compile_context>

<pallas_src>
import functools

import numpy as np
import jax
import jax.numpy as jnp
from jax import lax
from jax.experimental import pallas as pl
from jax.experimental.pallas import tpu as pltpu


# ----------------------------------------------------------------------------
# Pallas kernel: tiled matmul with fused bias / BN-affine / residual / ReLU
# ----------------------------------------------------------------------------

def _mm_fused_kernel(*refs, relu, has_bias, has_affine, affine_pre,
                     has_residual, single_k):
    a_ref, b_ref = refs[0], refs[1]
    idx = 2
    bias_ref = scale_ref = shift_ref = res_ref = None
    if has_bias:
        bias_ref = refs[idx]; idx += 1
    if has_affine:
        scale_ref = refs[idx]; shift_ref = refs[idx + 1]; idx += 2
    if has_residual:
        res_ref = refs[idx]; idx += 1
    o_ref = refs[idx]

    def epilogue(r):                      # all epilogue math in f32
        if has_bias:
            r = r + bias_ref[...]
        if has_affine and affine_pre:     # conv -> BN (-> add) (-> relu)
            r = r * scale_ref[...] + shift_ref[...]
        if has_residual:
            r = r + res_ref[...].astype(jnp.float32)
        if relu:
            r = jnp.maximum(r, 0.0)
        if has_affine and not affine_pre:  # conv -> relu -> BN (decoder order)
            r = r * scale_ref[...] + shift_ref[...]
        return r.astype(o_ref.dtype)

    if single_k:
        # Single K step: no accumulator scratch, no init/finalize branches.
        r = jnp.dot(a_ref[...], b_ref[...], preferred_element_type=jnp.float32)
        o_ref[...] = epilogue(r)
    else:
        acc_ref = refs[idx + 1]

        @pl.when(pl.program_id(2) == 0)
        def _():
            acc_ref[...] = jnp.zeros_like(acc_ref)

        acc_ref[...] += jnp.dot(a_ref[...], b_ref[...],
                                preferred_element_type=jnp.float32)

        @pl.when(pl.program_id(2) == pl.num_programs(2) - 1)
        def _():
            o_ref[...] = epilogue(acc_ref[...])


def _round_up(x, m):
    return (x + m - 1) // m * m


@functools.lru_cache(maxsize=1)
def _tpu_config():
    """Generation-dependent VMEM budget / limit and megacore-split gating."""
    vmem = None
    try:
        info = pltpu.get_tpu_info()
        for name in ("vmem_capacity_bytes", "vmem_bytes", "vmem_size_bytes"):
            v = getattr(info, name, None)
            if v:
                vmem = int(v)
                break
    except Exception:
        vmem = None
    if vmem is not None and vmem >= 100 * 1024 * 1024:
        # v5e / v6e: 128 MiB VMEM, single TensorCore -> big tiles, no split.
        return dict(budget=48 * 1024 * 1024,
                    vmem_limit=96 * 1024 * 1024,
                    split=False)
    # v7x (64 MiB VMEM, 2 TCs) or unknown: conservative budget, enable split.
    return dict(budget=16 * 1024 * 1024,
                vmem_limit=48 * 1024 * 1024,
                split=True)


def _choose_tiles(M, N, K, has_residual, cfg):
    """Adaptive (tm, tn, tk) under an explicit, generation-dependent VMEM
    budget (double buffering included)."""
    budget_bytes = cfg["budget"]

    # --- M tile (bf16 sublane packing -> multiples of 16) ---
    tm = min(256, _round_up(M, 16))
    M_pad = _round_up(M, tm)

    # --- N tile (unpadded full-width block for tiny N keeps HBM bytes down) ---
    if N < 128:
        N_pad = N
        tn = N
    else:
        N_pad = _round_up(N, 128)
        if N_pad <= 512:
            tn = N_pad
        else:
            tn = 512
            while N_pad % tn:
                tn -= 128

    # --- Megacore split (only on 2-TC chips): make a (1,1,k) grid 2-wide ---
    if cfg["split"] and (M_pad // tm) == 1 and (N_pad // max(tn, 1)) == 1:
        if N_pad % 256 == 0:
            tn = N_pad // 2
        elif tm >= 64 and tm % 32 == 0:
            tm //= 2
            M_pad = _round_up(M, tm)

    # --- K tile: as large as the VMEM budget allows (fewest grid steps) ---
    K128 = _round_up(K, 128)
    # out (x2 buffers, worst-case f32) + acc f32 (+ residual bf16 x2 buffers)
    fixed = tm * tn * (2 * 4 + 4) + (tm * tn * 2 * 2 if has_residual else 0)
    per_tk = 4 * (tm + tn)                       # bf16 A and B, double-buffered
    avail = max(budget_bytes - fixed, 128 * per_tk)
    tk_max = max(128, (avail // per_tk) // 128 * 128)
    steps = -(-K128 // tk_max)
    tk = _round_up(-(-K128 // steps), 128)
    K_pad = tk * steps
    return tm, tn, tk, M_pad, N_pad, K_pad


def matmul_fused(a, b, *, bias=None, scale=None, shift=None, affine_pre=True,
                 relu=False, residual=None, out_dtype=jnp.bfloat16):
    """out = epilogue(a @ b) with bias / BN affine / residual add / ReLU fused."""
    M, K = a.shape
    K2, N = b.shape
    assert K == K2
    has_bias = bias is not None
    has_affine = scale is not None
    has_residual = residual is not None

    cfg = _tpu_config()
    tm, tn, tk, M_pad, N_pad, K_pad = _choose_tiles(M, N, K, has_residual, cfg)
    single_k = (K_pad // tk) == 1

    a_p = jnp.pad(a.astype(jnp.bfloat16), ((0, M_pad - M), (0, K_pad - K)))
    b_p = jnp.pad(b.astype(jnp.bfloat16), ((0, K_pad - K), (0, N_pad - N)))

    inputs = [a_p, b_p]
    in_specs = [pl.BlockSpec((tm, tk), lambda i, j, k: (i, k)),
                pl.BlockSpec((tk, tn), lambda i, j, k: (k, j))]
    vec_spec = pl.BlockSpec((1, tn), lambda i, j, k: (0, j))

    def _vec(v):
        return jnp.pad(v.astype(jnp.float32), (0, N_pad - N)).reshape(1, N_pad)

    if has_bias:
        inputs.append(_vec(bias)); in_specs.append(vec_spec)
    if has_affine:
        inputs.append(_vec(scale)); in_specs.append(vec_spec)
        inputs.append(_vec(shift)); in_specs.append(vec_spec)
    if has_residual:
        inputs.append(jnp.pad(residual.astype(jnp.bfloat16),
                              ((0, M_pad - M), (0, N_pad - N))))
        in_specs.append(pl.BlockSpec((tm, tn), lambda i, j, k: (i, j)))

    grid = (M_pad // tm, N_pad // tn, K_pad // tk)
    out_bytes = jnp.dtype(out_dtype).itemsize
    bytes_accessed = (a_p.size * 2 + b_p.size * 2 + M_pad * N_pad * out_bytes
                      + (M_pad * N_pad * 2 if has_residual else 0))

    scratch = [] if single_k else [pltpu.VMEM((tm, tn), jnp.float32)]

    out = pl.pallas_call(
        functools.partial(_mm_fused_kernel, relu=relu, has_bias=has_bias,
                          has_affine=has_affine, affine_pre=affine_pre,
                          has_residual=has_residual, single_k=single_k),
        out_shape=jax.ShapeDtypeStruct((M_pad, N_pad), out_dtype),
        grid_spec=pltpu.PrefetchScalarGridSpec(
            num_scalar_prefetch=0,
            grid=grid,
            in_specs=in_specs,
            out_specs=pl.BlockSpec((tm, tn), lambda i, j, k: (i, j)),
            scratch_shapes=scratch,
        ),
        compiler_params=pltpu.CompilerParams(
            dimension_semantics=("parallel", "parallel", "arbitrary"),
            vmem_limit_bytes=cfg["vmem_limit"]),
        cost_estimate=pl.CostEstimate(flops=2 * M * N * K, transcendentals=0,
                                      bytes_accessed=bytes_accessed),
    )(*inputs)
    if M_pad == M and N_pad == N:
        return out
    return out[:M, :N]


# ----------------------------------------------------------------------------
# Convolution plumbing (im2col in plain JAX, matmul + epilogue in Pallas)
# ----------------------------------------------------------------------------

def im2col(x, kh, kw, stride, padding):
    N, H, W, C = x.shape
    xp = jnp.pad(x, ((0, 0), (padding, padding), (padding, padding), (0, 0)))
    Ho = (H + 2 * padding - kh) // stride + 1
    Wo = (W + 2 * padding - kw) // stride + 1
    cols = []
    for dh in range(kh):
        for dw in range(kw):
            cols.append(xp[:, dh:dh + stride * Ho:stride,
                           dw:dw + stride * Wo:stride, :])
    patches = jnp.concatenate(cols, axis=-1)          # feature order: (dh, dw, c)
    return patches.reshape(N * Ho * Wo, kh * kw * C), (N, Ho, Wo)


def conv2d_pallas(x, wmat, kh, kw, *, stride, padding, bias=None, scale=None,
                  shift=None, affine_pre=True, relu=False, residual=None,
                  out_dtype=jnp.bfloat16):
    # bf16 patches: halves the HBM traffic of the im2col-inflated tensor.
    patches, (N, Ho, Wo) = im2col(x.astype(jnp.bfloat16), kh, kw, stride, padding)
    cout = wmat.shape[1]
    res2 = None if residual is None else residual.reshape(-1, cout)
    out = matmul_fused(patches, wmat, bias=bias, scale=scale, shift=shift,
                       affine_pre=affine_pre, relu=relu, residual=res2,
                       out_dtype=out_dtype)
    return out.reshape(N, Ho, Wo, cout)


def conv_relu_bn(x, conv, bn, stride=1, padding=1):
    """conv(+bias) -> ReLU -> BN (decoder / bottleneck ordering), fully fused."""
    return conv2d_pallas(x, conv['w'], conv['kh'], conv['kw'], stride=stride,
                         padding=padding, bias=conv['b'],
                         scale=bn[0], shift=bn[1], affine_pre=False, relu=True)


def maxpool(x, k, s, p):
    init = jnp.array(-jnp.inf, dtype=x.dtype)
    return lax.reduce_window(x, init, lax.max,
                             (1, k, k, 1), (1, s, s, 1),
                             ((0, 0), (p, p), (p, p), (0, 0)))


def _interp_matrix(n_in, n_out):
    """align_corners=True bilinear interpolation matrix (n_out x n_in)."""
    if n_in == 1:
        return np.ones((n_out, 1), np.float32)
    pos = np.arange(n_out, dtype=np.float64) * (n_in - 1) / (n_out - 1)
    i0 = np.clip(np.floor(pos).astype(np.int64), 0, n_in - 2)
    w = (pos - i0).astype(np.float32)
    m = np.zeros((n_out, n_in), np.float32)
    m[np.arange(n_out), i0] += 1.0 - w
    m[np.arange(n_out), i0 + 1] += w
    return m


def upsample_bilinear_x2(x):
    """F.interpolate(scale_factor=2, mode='bilinear', align_corners=True), NHWC.
    Expressed as two dense interpolation matmuls (MXU-friendly, no gathers)."""
    N, H, W, C = x.shape
    A = jnp.asarray(_interp_matrix(H, 2 * H), dtype=x.dtype)   # (2H, H)
    B = jnp.asarray(_interp_matrix(W, 2 * W), dtype=x.dtype)   # (2W, W)
    t = jnp.einsum('ih,nhwc->niwc', A, x)
    out = jnp.einsum('jw,niwc->nijc', B, t)
    return out.astype(x.dtype)


# ----------------------------------------------------------------------------
# Deterministic parameter construction (weights prepared in final kernel form)
# ----------------------------------------------------------------------------

_KEY = [jax.random.PRNGKey(0)]


def _next_key():
    _KEY[0], sub = jax.random.split(_KEY[0])
    return sub


def make_conv(kh, kw, cin, cout, with_bias=False):
    fan_in = kh * kw * cin
    w = jax.random.normal(_next_key(), (kh, kw, cin, cout), jnp.float32) * np.sqrt(2.0 / fan_in)
    d = dict(w=w.reshape(kh * kw * cin, cout).astype(jnp.bfloat16), kh=kh, kw=kw)
    if with_bias:
        d['b'] = jax.random.normal(_next_key(), (cout,), jnp.float32) * 0.01
    return d


def make_bn_affine(c):
    # Eval-mode BN folded into f32 scale/shift at build time (identity stats).
    gamma = jnp.ones((c,), jnp.float32)
    beta = jnp.zeros((c,), jnp.float32)
    mean = jnp.zeros((c,), jnp.float32)
    var = jnp.ones((c,), jnp.float32)
    eps = 1e-5
    scale = gamma / jnp.sqrt(var + eps)
    shift = beta - mean * scale
    return scale, shift


def make_basic_block(cin, cout, stride):
    p = dict(stride=stride,
             conv1=make_conv(3, 3, cin, cout), bn1=make_bn_affine(cout),
             conv2=make_conv(3, 3, cout, cout), bn2=make_bn_affine(cout),
             down=None)
    if stride != 1 or cin != cout:
        p['down'] = dict(conv=make_conv(1, 1, cin, cout), bn=make_bn_affine(cout))
    return p


def make_resnet_layer(cin, cout, nblocks, stride):
    blocks = [make_basic_block(cin, cout, stride)]
    for _ in range(nblocks - 1):
        blocks.append(make_basic_block(cout, cout, 1))
    return blocks


def make_expansive(cin, cmid, cout):
    return dict(conv1=make_conv(3, 3, cin, cmid, with_bias=True), bn1=make_bn_affine(cmid),
                conv2=make_conv(3, 3, cmid, cout, with_bias=True), bn2=make_bn_affine(cout))


def make_params(in_channel, out_channel):
    p = {}
    p['conv1'] = make_conv(7, 7, in_channel, 64)
    p['bn1'] = make_bn_affine(64)
    p['layer1'] = make_resnet_layer(64, 64, 3, 1)
    p['layer2'] = make_resnet_layer(64, 128, 4, 2)
    p['layer3'] = make_resnet_layer(128, 256, 6, 2)
    p['layer4'] = make_resnet_layer(256, 512, 3, 2)
    p['bneck'] = dict(conv1=make_conv(3, 3, 512, 1024, with_bias=True), bn1=make_bn_affine(1024),
                      conv2=make_conv(3, 3, 1024, 1024, with_bias=True), bn2=make_bn_affine(1024))
    p['dec4'] = make_expansive(1024 + 512, 512, 512)
    p['dec3'] = make_expansive(512 + 256, 256, 256)
    p['dec2'] = make_expansive(256 + 128, 128, 128)
    p['dec1'] = make_expansive(128 + 64, 64, 64)
    p['dec0'] = make_expansive(64, 32, 32)
    p['outc'] = make_conv(1, 1, 32, out_channel, with_bias=True)
    return p


# ----------------------------------------------------------------------------
# Forward pass (all activations bf16; kernel epilogues in f32)
# ----------------------------------------------------------------------------

def basic_block_forward(x, p):
    # conv -> BN -> ReLU (BN affine fused pre-ReLU in the matmul epilogue)
    out = conv2d_pallas(x, p['conv1']['w'], 3, 3, stride=p['stride'], padding=1,
                        scale=p['bn1'][0], shift=p['bn1'][1],
                        affine_pre=True, relu=True)
    if p['down'] is not None:
        dn = p['down']
        identity = conv2d_pallas(x, dn['conv']['w'], 1, 1, stride=p['stride'],
                                 padding=0, scale=dn['bn'][0], shift=dn['bn'][1],
                                 affine_pre=True, relu=False)
    else:
        identity = x
    # conv -> BN -> (+identity) -> ReLU, all fused in the second conv's epilogue.
    out = conv2d_pallas(out, p['conv2']['w'], 3, 3, stride=1, padding=1,
                        scale=p['bn2'][0], shift=p['bn2'][1],
                        affine_pre=True, relu=True, residual=identity)
    return out


def layer_forward(x, blocks):
    for b in blocks:
        x = basic_block_forward(x, b)
    return x


def expansive_forward(d, e, p):
    d = upsample_bilinear_x2(d)
    if e is not None:
        # TODO(synk): the concat could be fused as a split-K reduction in the kernel.
        d = jnp.concatenate([e, d], axis=-1)   # torch.cat([e, d], dim=1) in NHWC
    x = conv_relu_bn(d, p['conv1'], p['bn1'], 1, 1)
    x = conv_relu_bn(x, p['conv2'], p['bn2'], 1, 1)
    return x


def resnet34_unet_forward(x_nchw, params):
    x = jnp.transpose(x_nchw, (0, 2, 3, 1)).astype(jnp.bfloat16)   # NCHW -> NHWC
    # layer0: conv1 / bn1 / relu / maxpool
    x = conv2d_pallas(x, params['conv1']['w'], 7, 7, stride=2, padding=3,
                      scale=params['bn1'][0], shift=params['bn1'][1],
                      affine_pre=True, relu=True)
    x = maxpool(x, 3, 2, 1)
    e1 = layer_forward(x, params['layer1'])
    e2 = layer_forward(e1, params['layer2'])
    e3 = layer_forward(e2, params['layer3'])
    e4 = layer_forward(e3, params['layer4'])
    # bottleneck: conv/relu/bn, conv/relu/bn, maxpool 2x2
    b = params['bneck']
    bott = conv_relu_bn(e4, b['conv1'], b['bn1'])
    bott = conv_relu_bn(bott, b['conv2'], b['bn2'])
    bott = maxpool(bott, 2, 2, 0)
    # decoder
    d4 = expansive_forward(bott, e4, params['dec4'])
    d3 = expansive_forward(d4, e3, params['dec3'])
    d2 = expansive_forward(d3, e2, params['dec2'])
    d1 = expansive_forward(d2, e1, params['dec1'])
    d0 = expansive_forward(d1, None, params['dec0'])
    # final 1x1 conv (tiny N=2): unpadded full-width block, f32 output.
    oc = params['outc']
    out = conv2d_pallas(d0, oc['w'], 1, 1, stride=1, padding=0, bias=oc['b'],
                        out_dtype=jnp.float32)
    return jnp.transpose(out, (0, 3, 1, 2))    # NHWC -> NCHW


# ----------------------------------------------------------------------------
# Main
# ----------------------------------------------------------------------------

if __name__ == "__main__":
    in_channel, out_channel = 3, 2
    params = make_params(in_channel, out_channel)

    # Smallest spatial size that survives the /64 bottleneck reduction is 64.
    x = jax.random.normal(jax.random.PRNGKey(0), (1, in_channel, 64, 64), jnp.float32)

    y = resnet34_unet_forward(x, params)
    y = jax.block_until_ready(y)
    assert y.shape == (1, out_channel, 32, 32), y.shape
    assert jnp.all(jnp.isfinite(y))
    print("KERNEL_OK")
</pallas_src>

<mosaic_0001>
module attributes {stable_mosaic.version = 11 : i64} {
  func.func @_mm_fused_kernel(%arg0: i32, %arg1: i32, %arg2: i32, %arg3: memref<256x256xbf16, #tpu.memory_space<vmem>>, %arg4: memref<256x64xbf16, #tpu.memory_space<vmem>>, %arg5: memref<1x64xf32, #tpu.memory_space<vmem>>, %arg6: memref<1x64xf32, #tpu.memory_space<vmem>>, %arg7: memref<256x64xbf16, #tpu.memory_space<vmem>>) attributes {dimension_semantics = [#tpu.dimension_semantics<parallel>, #tpu.dimension_semantics<parallel>, #tpu.dimension_semantics<arbitrary>], iteration_bounds = array<i64: 4, 1, 1>, scalar_prefetch = 0 : i64, scratch_operands = 0 : i64, tpu.core_type = #tpu.core_type<tc>, window_params = [{transform_indices = @transform_0, window_bounds = array<i64: 256, 256>}, {transform_indices = @transform_1, window_bounds = array<i64: 256, 64>}, {transform_indices = @transform_2, window_bounds = array<i64: 1, 64>}, {transform_indices = @transform_3, window_bounds = array<i64: 1, 64>}, {transform_indices = @transform_4, window_bounds = array<i64: 256, 64>}]} {
    %c0 = arith.constant 0 : index
    %c0_0 = arith.constant 0 : index
    %0 = vector.load %arg3[%c0, %c0_0] : memref<256x256xbf16, #tpu.memory_space<vmem>>, vector<256x256xbf16>
    %c0_1 = arith.constant 0 : index
    %c0_2 = arith.constant 0 : index
    %1 = vector.load %arg4[%c0_1, %c0_2] : memref<256x64xbf16, #tpu.memory_space<vmem>>, vector<256x64xbf16>
    %cst = arith.constant dense<0.000000e+00> : vector<256x64xf32>
    %2 = tpu.matmul %0, %1, %cst {dimension_numbers = #tpu.dot_dimension_numbers<[1], [0], [0], [1], [0, 0, 1, 1], [], []>} : vector<256x256xbf16>, vector<256x64xbf16>, vector<256x64xf32> -> vector<256x64xf32>
    %c0_3 = arith.constant 0 : index
    %c0_4 = arith.constant 0 : index
    %3 = vector.load %arg5[%c0_3, %c0_4] : memref<1x64xf32, #tpu.memory_space<vmem>>, vector<1x64xf32>
    %4 = vector.broadcast %3 : vector<1x64xf32> to vector<256x64xf32>
    %5 = arith.mulf %2, %4 : vector<256x64xf32>
    %c0_5 = arith.constant 0 : index
    %c0_6 = arith.constant 0 : index
    %6 = vector.load %arg6[%c0_5, %c0_6] : memref<1x64xf32, #tpu.memory_space<vmem>>, vector<1x64xf32>
    %7 = vector.broadcast %6 : vector<1x64xf32> to vector<256x64xf32>
    %8 = arith.addf %5, %7 : vector<256x64xf32>
    %cst_7 = arith.constant 0.000000e+00 : f32
    %9 = vector.broadcast %cst_7 : f32 to vector<256x64xf32>
    %10 = arith.maximumf %8, %9 : vector<256x64xf32>
    %11 = arith.truncf %10 : vector<256x64xf32> to vector<256x64xbf16>
    %c0_8 = arith.constant 0 : index
    %c0_9 = arith.constant 0 : index
    %12 = vector.load %arg7[%c0_8, %c0_9] : memref<256x64xbf16, #tpu.memory_space<vmem>>, vector<256x64xbf16>
    tpu.vector_store %arg7[%c0_8, %c0_9], %11 {strides = array<i32>} : memref<256x64xbf16, #tpu.memory_space<vmem>>, vector<256x64xbf16>,
    return
  }
  func.func @transform_0(%arg0: i32, %arg1: i32, %arg2: i32) -> (i32, i32) {
    %c0_i32 = arith.constant 0 : i32
    return %arg0, %arg2 : i32, i32
  }
  func.func @transform_1(%arg0: i32, %arg1: i32, %arg2: i32) -> (i32, i32) {
    %c0_i32 = arith.constant 0 : i32
    return %arg2, %arg1 : i32, i32
  }
  func.func @transform_2(%arg0: i32, %arg1: i32, %arg2: i32) -> (i32, i32) {
    %c0_i32 = arith.constant 0 : i32
    %c0_i32_0 = arith.constant 0 : i32
    return %c0_i32, %arg1 : i32, i32
  }
  func.func @transform_3(%arg0: i32, %arg1: i32, %arg2: i32) -> (i32, i32) {
    %c0_i32 = arith.constant 0 : i32
    %c0_i32_0 = arith.constant 0 : i32
    return %c0_i32, %arg1 : i32, i32
  }
  func.func @transform_4(%arg0: i32, %arg1: i32, %arg2: i32) -> (i32, i32) {
    %c0_i32 = arith.constant 0 : i32
    return %arg0, %arg1 : i32, i32
  }
}

</mosaic_0001>

<bundles_post_ra>
// kernel: tpu_custom_call.1
= control target key start
LH: loop header
LB: loop body
LE: loop exit
PB: predicated region body
PF: predicated region fallthrough
CT: control target
= control target key end

     0   :  { %9 = vsyncpa [#allocation3], 0  ;;  %s1901_s0 = inlined_call_operand.hbm [shape: bf16[1024,256], index: 0, kind: input, shape index: {}]   ;;  %s1902_s1 = inlined_call_operand.vmem [shape: bf16[256,64], index: 1, kind: input, shape index: {}]   ;;  %s1903_s2 = inlined_call_operand.vmem [shape: f32[1,64], index: 2, kind: input, shape index: {}]   ;;  %s1904_s3 = inlined_call_operand.vmem [shape: f32[1,64], index: 3, kind: input, shape index: {}]   ;;  %s1905_s4 = inlined_call_operand.vmem [shape: bf16[1024,64], index: 4, kind: output, shape index: {}]  }
   0x1   :  { %11 = vsyncpa [#allocation3 + $0x1], 0  ;;  %s1560_s15 = smov 0   ;;  %s1562_s16 = smov 0  }
   0x2   :  { %s1564_s17 = smov 0   ;;  %s1566_s18 = smov 0  }
   0x3   :  { %s1568_s19 = smov 0   ;;  %s1570_s20 = smov 0  }
   0x4 LB: > { %s1117_s21 = sadd.s32 4294967295, %s1531_s20   ;;  %s36_s22 = sadd.s32 1, %s1527_s19  ;;  %s1531_s20 = sphi %s1570_s20, %s17_s20   ;;  %s1527_s19 = sphi %s1568_s19, %s1912_s19   ;;  %s1523_s18 = sphi %s1566_s18, %s1911_s18   ;;  %s1519_s17 = sphi %s1564_s17, %s1910_s17   ;;  %s1515_s16 = sphi %s1562_s16, %s1909_s16   ;;  %s1511_s15 = sphi %s1560_s15, %s1908_s15  }
   0x5   : > { %p38_p0 = scmp.ge.s32.totalorder %s36_s22, 4  ;;  %s45_s23 = sadd.s32 1, %s1519_s17 }
   0x6   : > { %p52_p1 = scmp.ne.s32.totalorder %s1519_s17, %s1515_s16  ;;  %p53_p2 = scmp.eq.s32.totalorder %s1531_s20, 0 }
   0x7   : > { %s1914_s22 = smov (%p38_p0, %s36_s22), 0  ;;  %p58_p4 = scmp.ne.s32.totalorder %s1515_s16, %s1511_s15 }
   0x8   : > { %p1596_p3 = por %p53_p2, %p52_p1  ;;  %s40_s25 = ssub.s32 %s1527_s19, %s1914_s22 }
   0x9   : > { %p59_p5 = scmp.eq.s32.totalorder %s1117_s21, 0  ;;  %p43_p6 = scmp.eq.s32.totalorder %s40_s25, 0 }
   0xa   : > { %p1398_p8 = scmp.lt.s32.totalorder %s1531_s20, 4  ;;  %s214_s28 = sand.u32 1, %s1519_s17  }
   0xb   : > { %p1603_p7 = por %p59_p5, %p58_p4  ;;  %s1327_s29 = sshll.u32 %s1527_s19, 8 }
   0xc   : > { %s1609_s27 = scalar_select %p43_p6, %s1519_s17, %s45_s23  }
   0xd   : > { %s1124_s30 = sshll.u32 %s214_s28, 8  ;;  %s226_s7 = scalar_lea.hbm %s1901_s0, %s1327_s29 }
   0xe   : > { %s227_s8 = sshll.u32 %s226_s7, 4  ;;  %s218_s9 = scalar_lea.vmem [#allocation2], %s1124_s30  ;;  %s228_s8 = int_to_ptr.hbm [resolvable:$true] %s227_s8 }
   0xf   : > { %s229_s10 = sshll.u32 %s218_s9, 4  ;;  %p1395_p9 = pnand %p1398_p8, %p1596_p3  ;;  %s230_s10 = int_to_ptr.vmem [resolvable:$true] %s229_s10 }
  0x10   : > { %p1128_p10 = scmp.ge.s32.totalorder %s1531_s20, 1  ;;  %p237_p11 = scmp.lt.s32.totalorder %s1531_s20, 5 }
  0x11   : > { %s215_s11 = scalar_lea.sflag [#allocation3], %s214_s28  ;;  %s1533_s12 = smov 128  }
  0x12   : > { %s1534_s13 = smov 8   ;;  %p238_p12 = pnand %p1128_p10, %p237_p11 }
  0x13   : > { %1397 = dma.hbm_to_vmem [thread:$0]  (!%p1395_p9), %s228_s8, 4096, %s230_s10, %s215_s11, %s1533_s12, %s1533_s12, %s1534_s13  }
  0x14   : > { %241 = sbr.rel (%p238_p12) target bundleno = 322 (0x142), region = 36  ;;  %s243_s14 = sand.u32 (!%p238_p12), 1, %s1515_s16  }
  0x15   : > { %s1129_s15 = sshll.u32 (!%p238_p12), %s243_s14, 8  ;;  %s244_s21 = scalar_lea.sflag (!%p238_p12), [#allocation3], %s243_s14 }
  0x16   : > { %s1621_s23 = scalar_lea.vmem (!%p238_p12), [#allocation2], %s1129_s15 }
  0x19   : > { %1506 = dma.done.wait (%p1603_p7), %s244_s21, 4096  }
  0x1a   : > { %1508 = vsyncadd (%p1603_p7), %s244_s21, 4294963200  ;;  %v1367_v0 = vld [vmem:[%s1902_s1 + $0x38] sm:$0xff]  ;;  %v1366_v2 = vld [vmem:[%s1902_s1 + $0x30] sm:$0xff]  ;;  %s1130_s13 = sshll.u32 %s1523_s18, 5  ;;  %vm950_vm0 = vcmask 519168  }
  0x1b   : > { %v1375_v1 = vld [vmem:[%s1902_s1 + $0x78] sm:$0xff]  ;;  %636 = vmatpush.bf16.msra.mxu0 %v1367_v0  ;;  %1376 = vmatpush.bf16.msra.mxu2 %v1367_v0  ;;  %v1374_v3 = vld [vmem:[%s1902_s1 + $0x70] sm:$0xff]  ;;  %v1365_v4 = vld [vmem:[%s1902_s1 + $0x28] sm:$0xff]  ;;  %p308_p13 = scmp.lt.s32.totalorder %s1130_s13, 127 }
  0x1c   : > { %725 = vmatpush.bf16.msra.mxu1 %v1375_v1  ;;  %1384 = vmatpush.bf16.msra.mxu3 %v1375_v1  ;;  %v1373_v5 = vld [vmem:[%s1902_s1 + $0x68] sm:$0xff]  ;;  %v1364_v6 = vld [vmem:[%s1902_s1 + $0x20] sm:$0xff]  ;;  %v1363_v8 = vld [vmem:[%s1902_s1 + $0x18] sm:$0xff] }
  0x1d   : > { %v1372_v7 = vld [vmem:[%s1902_s1 + $0x60] sm:$0xff]  ;;  %v1371_v9 = vld [vmem:[%s1902_s1 + $0x58] sm:$0xff]  ;;  %v1362_v10 = vld [vmem:[%s1902_s1 + $0x10] sm:$0xff]  ;;  %s1916_s13 = smov (!%p308_p13, %s1130_s13), 127 }
  0x1e   : > { %v1370_v11 = vld [vmem:[%s1902_s1 + $0x50] sm:$0xff]  ;;  %v1361_v12 = vld [vmem:[%s1902_s1 + $0x8] sm:$0xff]  ;;  %v1360_v14 = vld [vmem:[%s1902_s1] sm:$0xff]  ;;  %s1131_s24 = sshll.u32 %s1916_s13, 2 }
  0x1f   : > { %637 = vmatpush.bf16.msra.mxu0 %v1366_v2  ;;  %1377 = vmatpush.bf16.msra.mxu2 %v1366_v2  ;;  %v1369_v13 = vld [vmem:[%s1902_s1 + $0x48] sm:$0xff]  ;;  %v1368_v15 = vld [vmem:[%s1902_s1 + $0x40] sm:$0xff]  ;;  %v1142_v28 = vld [vmem:[%s1621_s23 + $0x10] sm:$0xf]  ;;  %s1755_s28 = scalar_lea.vmem %s1905_s4, %s1131_s24 }
  0x20   : > { %726 = vmatpush.bf16.msra.mxu1 %v1374_v3  ;;  %1385 = vmatpush.bf16.msra.mxu3 %v1374_v3  ;;  %v1134_v16 = vld [vmem:[%s1621_s23] sm:$0xf]  ;;  %v1329_v17 = vld [vmem:[%s1621_s23 + $0x4] sm:$0xf0]  ;;  %v1328_v20 = vld [vmem:[%s1621_s23 + $0x4] sm:$0xf] }
  0x21   : > { %v1198_v18 = vld [vmem:[%s1621_s23 + $0x80] sm:$0xf]  ;;  %v1345_v19 = vld [vmem:[%s1621_s23 + $0x84] sm:$0xf0]  ;;  %v1136_v21 = vld [vmem:[%s1621_s23 + $0x8] sm:$0xf0]  ;;  %v1135_v24 = vor.u32 %v1329_v17, %v1134_v16 }
  0x22   : > { %v1344_v22 = vld [vmem:[%s1621_s23 + $0x84] sm:$0xf]  ;;  %v1200_v23 = vld [vmem:[%s1621_s23 + $0x88] sm:$0xf0]  ;;  %v1199_v25 = vor.u32 %v1345_v19, %v1198_v18  ;;  %v1139_v26 = vor.u32 %v1328_v20, %v1136_v21  ;;  %v1331_v29 = vld [vmem:[%s1621_s23 + $0x14] sm:$0xf0] }
  0x23   : > { %638 = vmatpush.bf16.msra.mxu0 %v1365_v4  ;;  %1378 = vmatpush.bf16.msra.mxu2 %v1365_v4  ;;  %v1203_v27 = vor.u32 %v1344_v22, %v1200_v23  ;;  %v1206_v30 = vld [vmem:[%s1621_s23 + $0x90] sm:$0xf]  ;;  %v1347_v31 = vld [vmem:[%s1621_s23 + $0x94] sm:$0xf0]  ;;  %v1330_v32 = vld [vmem:[%s1621_s23 + $0x14] sm:$0xf]  ;;  %v1143_v36 = vor.u32 %v1331_v29, %v1142_v28 }
  0x24   : > { %727 = vmatpush.bf16.msra.mxu1 %v1373_v5  ;;  %1386 = vmatpush.bf16.msra.mxu3 %v1373_v5  ;;  %v1144_v33 = vld [vmem:[%s1621_s23 + $0x18] sm:$0xf0]  ;;  %v1346_v34 = vld [vmem:[%s1621_s23 + $0x94] sm:$0xf]  ;;  %v1207_v37 = vor.u32 %v1347_v31, %v1206_v30  ;;  %v1150_v40 = vld [vmem:[%s1621_s23 + $0x20] sm:$0xf] }
  0x25   : > { %v1208_v35 = vld [vmem:[%s1621_s23 + $0x98] sm:$0xf0]  ;;  %v1147_v38 = vor.u32 %v1330_v32, %v1144_v33  ;;  %v1333_v41 = vld [vmem:[%s1621_s23 + $0x24] sm:$0xf0]  ;;  %v1214_v42 = vld [vmem:[%s1621_s23 + $0xa0] sm:$0xf] }
  0x26   : > { %v1211_v39 = vor.u32 %v1346_v34, %v1208_v35  ;;  %v1349_v43 = vld [vmem:[%s1621_s23 + $0xa4] sm:$0xf0]  ;;  %v1332_v44 = vld [vmem:[%s1621_s23 + $0x24] sm:$0xf]  ;;  %v1152_v45 = vld [vmem:[%s1621_s23 + $0x28] sm:$0xf0]  ;;  %v1151_v48 = vor.u32 %v1333_v41, %v1150_v40 }
  0x27   : > { %639 = vmatpush.bf16.msra.mxu0 %v1364_v6  ;;  %1379 = vmatpush.bf16.msra.mxu2 %v1364_v6  ;;  %v1348_v46 = vld [vmem:[%s1621_s23 + $0xa4] sm:$0xf]  ;;  %v1216_v47 = vld [vmem:[%s1621_s23 + $0xa8] sm:$0xf0]  ;;  %v1215_v49 = vor.u32 %v1349_v43, %v1214_v42  ;;  %v1155_v50 = vor.u32 %v1332_v44, %v1152_v45  ;;  %v1158_v52 = vld [vmem:[%s1621_s23 + $0x30] sm:$0xf] }
  0x28   : > { %728 = vmatpush.bf16.msra.mxu1 %v1372_v7  ;;  %1387 = vmatpush.bf16.msra.mxu3 %v1372_v7  ;;  %v1219_v51 = vor.u32 %v1348_v46, %v1216_v47  ;;  %v1335_v53 = vld [vmem:[%s1621_s23 + $0x34] sm:$0xf0]  ;;  %v1222_v54 = vld [vmem:[%s1621_s23 + $0xb0] sm:$0xf]  ;;  %v1334_v56 = vld [vmem:[%s1621_s23 + $0x34] sm:$0xf] }
  0x29   : > { %v1351_v55 = vld [vmem:[%s1621_s23 + $0xb4] sm:$0xf0]  ;;  %v1160_v57 = vld [vmem:[%s1621_s23 + $0x38] sm:$0xf0]  ;;  %v1350_v58 = vld [vmem:[%s1621_s23 + $0xb4] sm:$0xf]  ;;  %v1159_v60 = vor.u32 %v1335_v53, %v1158_v52 }
  0x2a   : > { %v1224_v59 = vld [vmem:[%s1621_s23 + $0xb8] sm:$0xf0]  ;;  %v1223_v61 = vor.u32 %v1351_v55, %v1222_v54  ;;  %v1163_v62 = vor.u32 %v1334_v56, %v1160_v57  ;;  %v1166_v0 = vld [vmem:[%s1621_s23 + $0x40] sm:$0xf]  ;;  %v1337_v1 = vld [vmem:[%s1621_s23 + $0x44] sm:$0xf0] }
  0x2b   : > { %640 = vmatpush.bf16.msra.mxu0 %v1363_v8  ;;  %1380 = vmatpush.bf16.msra.mxu2 %v1363_v8  ;;  %v1227_v63 = vor.u32 %v1350_v58, %v1224_v59  ;;  %v1230_v2 = vld [vmem:[%s1621_s23 + $0xc0] sm:$0xf]  ;;  %v1353_v3 = vld [vmem:[%s1621_s23 + $0xc4] sm:$0xf0]  ;;  %v1336_v4 = vld [vmem:[%s1621_s23 + $0x44] sm:$0xf]  ;;  %v1167_v8 = vor.u32 %v1337_v1, %v1166_v0 }
  0x2c   : > { %729 = vmatpush.bf16.msra.mxu1 %v1371_v9  ;;  %1388 = vmatpush.bf16.msra.mxu3 %v1371_v9  ;;  %v1168_v5 = vld [vmem:[%s1621_s23 + $0x48] sm:$0xf0]  ;;  %v1352_v6 = vld [vmem:[%s1621_s23 + $0xc4] sm:$0xf]  ;;  %v1231_v9 = vor.u32 %v1353_v3, %v1230_v2  ;;  %v1338_v16 = vld [vmem:[%s1621_s23 + $0x54] sm:$0xf] }
  0x2d   : > { %v1232_v7 = vld [vmem:[%s1621_s23 + $0xc8] sm:$0xf0]  ;;  %v1176_v17 = vld [vmem:[%s1621_s23 + $0x58] sm:$0xf0]  ;;  %v1354_v18 = vld [vmem:[%s1621_s23 + $0xd4] sm:$0xf] }
  0x2e   : > { %v1240_v19 = vld [vmem:[%s1621_s23 + $0xd8] sm:$0xf0]  ;;  %v1179_v22 = vor.u32 %v1338_v16, %v1176_v17  ;;  %v1340_v28 = vld [vmem:[%s1621_s23 + $0x64] sm:$0xf]  ;;  %v1184_v29 = vld [vmem:[%s1621_s23 + $0x68] sm:$0xf0] }
  0x2f   : > { %641 = vmatpush.bf16.msra.mxu0 %v1362_v10  ;;  %1381 = vmatpush.bf16.msra.mxu2 %v1362_v10  ;;  %v1171_v10 = vor.u32 %v1336_v4, %v1168_v5  ;;  %v1243_v23 = vor.u32 %v1354_v18, %v1240_v19  ;;  %v1356_v30 = vld [vmem:[%s1621_s23 + $0xe4] sm:$0xf]  ;;  %v1248_v31 = vld [vmem:[%s1621_s23 + $0xe8] sm:$0xf0]  ;;  %v1187_v34 = vor.u32 %v1340_v28, %v1184_v29  ;;  %v1342_v40 = vld [vmem:[%s1621_s23 + $0x74] sm:$0xf] }
  0x30   : > { %730 = vmatpush.bf16.msra.mxu1 %v1370_v11  ;;  %1389 = vmatpush.bf16.msra.mxu3 %v1370_v11  ;;  %v1235_v11 = vor.u32 %v1352_v6, %v1232_v7  ;;  %v1251_v35 = vor.u32 %v1356_v30, %v1248_v31  ;;  %v1192_v41 = vld [vmem:[%s1621_s23 + $0x78] sm:$0xf0]  ;;  %v1358_v42 = vld [vmem:[%s1621_s23 + $0xf4] sm:$0xf]  ;;  %v1748_v52 = vld [vmem:[%s1904_s3] ss:$0 sm:$0xff] }
  0x31   : > { %v1256_v43 = vld [vmem:[%s1621_s23 + $0xf8] sm:$0xf0]  ;;  %v1195_v46 = vor.u32 %v1342_v40, %v1192_v41 }
  0x32   : > { %v1259_v47 = vor.u32 %v1358_v42, %v1256_v43 }
  0x33   : > { %642 = vmatpush.bf16.msra.mxu0 %v1361_v12  ;;  %1382 = vmatpush.bf16.msra.mxu2 %v1361_v12  ;;  %v1174_v12 = vld [vmem:[%s1621_s23 + $0x50] sm:$0xf] }
  0x34   : > { %731 = vmatpush.bf16.msra.mxu1 %v1369_v13  ;;  %1390 = vmatpush.bf16.msra.mxu3 %v1369_v13  ;;  %v1339_v13 = vld [vmem:[%s1621_s23 + $0x54] sm:$0xf0] }
  0x35   : > { %v1175_v20 = vor.u32 %v1339_v13, %v1174_v12 }
  0x37   : > { %643 = vmatpush.bf16.msra.mxu0 %v1360_v14  ;;  %1383 = vmatpush.bf16.msra.mxu2 %v1360_v14  ;;  %v1238_v14 = vld [vmem:[%s1621_s23 + $0xd0] sm:$0xf] }
  0x38   : > { %732 = vmatpush.bf16.msra.mxu1 %v1368_v15  ;;  %1391 = vmatpush.bf16.msra.mxu3 %v1368_v15  ;;  %v1355_v15 = vld [vmem:[%s1621_s23 + $0xd4] sm:$0xf0] }
  0x39   : > { %v1239_v21 = vor.u32 %v1355_v15, %v1238_v14 }
  0x3a   : > { %644 = vmatmul.bf16.vlgmr.msra.gmra.mxu0 %v1135_v24  ;;  %684 = vmatmul.bf16.vlgmr.msra.gmra.mxu2 %v1199_v25  ;;  %v1182_v24 = vld [vmem:[%s1621_s23 + $0x60] sm:$0xf]  ;;  %v1341_v25 = vld [vmem:[%s1621_s23 + $0x64] sm:$0xf0] }
  0x3b   : > { %733 = vmatmul.bf16.vlgmr.msra.gmra.mxu1 %v1139_v26  ;;  %773 = vmatmul.bf16.vlgmr.msra.gmra.mxu3 %v1203_v27  ;;  %v1246_v26 = vld [vmem:[%s1621_s23 + $0xe0] sm:$0xf]  ;;  %v1357_v27 = vld [vmem:[%s1621_s23 + $0xe4] sm:$0xf0]  ;;  %v1183_v32 = vor.u32 %v1341_v25, %v1182_v24 }
  0x3c   : > { %v1247_v33 = vor.u32 %v1357_v27, %v1246_v26 }
  0x4a   : > { %649 = vmatmul.bf16.gmra.mxu0 %v1143_v36  ;;  %689 = vmatmul.bf16.gmra.mxu2 %v1207_v37  ;;  %v1190_v36 = vld [vmem:[%s1621_s23 + $0x70] sm:$0xf]  ;;  %v1343_v37 = vld [vmem:[%s1621_s23 + $0x74] sm:$0xf0] }
  0x4b   : > { %738 = vmatmul.bf16.gmra.mxu1 %v1147_v38  ;;  %778 = vmatmul.bf16.gmra.mxu3 %v1211_v39  ;;  %v1254_v38 = vld [vmem:[%s1621_s23 + $0xf0] sm:$0xf]  ;;  %v1359_v39 = vld [vmem:[%s1621_s23 + $0xf4] sm:$0xf0]  ;;  %v1191_v44 = vor.u32 %v1343_v37, %v1190_v36 }
  0x4c   : > { %v1255_v45 = vor.u32 %v1359_v39, %v1254_v38 }
  0x5a   : > { %654 = vmatmul.bf16.gmra.mxu0 %v1151_v48  ;;  %694 = vmatmul.bf16.gmra.mxu2 %v1215_v49  ;;  %v1743_v49 = vld [vmem:[%s1903_s2] ss:$0 sm:$0xff] }
  0x5b   : > { %743 = vmatmul.bf16.gmra.mxu1 %v1155_v50  ;;  %783 = vmatmul.bf16.gmra.mxu3 %v1219_v51 }
  0x6a   : > { %659 = vmatmul.bf16.gmra.mxu0 %v1159_v60  ;;  %699 = vmatmul.bf16.gmra.mxu2 %v1223_v61 }
  0x6b   : > { %748 = vmatmul.bf16.gmra.mxu1 %v1163_v62  ;;  %788 = vmatmul.bf16.gmra.mxu3 %v1227_v63 }
  0x7a   : > { %664 = vmatmul.bf16.gmra.mxu0 %v1167_v8  ;;  %704 = vmatmul.bf16.gmra.mxu2 %v1231_v9 }
  0x7b   : > { %753 = vmatmul.bf16.gmra.mxu1 %v1171_v10  ;;  %793 = vmatmul.bf16.gmra.mxu3 %v1235_v11 }
  0x8a   : > { %669 = vmatmul.bf16.gmra.mxu0 %v1175_v20  ;;  %709 = vmatmul.bf16.gmra.mxu2 %v1239_v21 }
  0x8b   : > { %758 = vmatmul.bf16.gmra.mxu1 %v1179_v22  ;;  %798 = vmatmul.bf16.gmra.mxu3 %v1243_v23 }
  0x9a   : > { %674 = vmatmul.bf16.gmra.mxu0 %v1183_v32  ;;  %714 = vmatmul.bf16.gmra.mxu2 %v1247_v33 }
  0x9b   : > { %763 = vmatmul.bf16.gmra.mxu1 %v1187_v34  ;;  %803 = vmatmul.bf16.gmra.mxu3 %v1251_v35 }
  0xaa   : > { %679 = vmatmul.bf16.gmra.mxu0 %v1191_v44  ;;  %719 = vmatmul.bf16.gmra.mxu2 %v1255_v45 }
  0xab   : > { %768 = vmatmul.bf16.gmra.mxu1 %v1195_v46  ;;  %808 = vmatmul.bf16.gmra.mxu3 %v1259_v47 }
  0xb7   : > { %v645_v48 = vpop.f32.mrf.mxu0 }
  0xb8   : > { %v734_v50 = vpop.f32.mrf.mxu1 }
  0xb9   : > { %v735_v51 = vadd.f32 %v734_v50, %v645_v48 }
  0xbb   : > { %v818_v53 = vmul.f32 %v1743_v49, %v735_v51 }
  0xbd   : > { %v854_v54 = vadd.f32 %v1748_v52, %v818_v53  ;;  %v685_v55 = vpop.f32.mrf.mxu2 }
  0xbe   : > { %v774_v56 = vpop.f32.mrf.mxu3 }
  0xbf   : > { %v886_v57 = vmax.f32 %v854_v54, 0.0  ;;  %v775_v58 = vadd.f32 %v774_v56, %v685_v55  ;;  %v647_v59 = vpop.f32.mrf.mxu0 }
  0xc0   : > { %v736_v60 = vpop.f32.mrf.mxu1 }
  0xc1   : > { %v918_v61 = vpack.c.bf16 %v886_v57, %v886_v57  ;;  %v834_v62 = vmul.f32 %v1743_v49, %v775_v58  ;;  %v737_v63 = vadd.f32 %v736_v60, %v647_v59 }
  0xc3   : > { %951 = vst.msk [vmem:[%s1755_s28] sm:$0xf] %vm950_vm0, %v918_v61  ;;  %v870_v0 = vadd.f32 %v1748_v52, %v834_v62  ;;  %v819_v1 = vmul.f32 %v1743_v49, %v737_v63 }
  0xc5   : > { %v902_v2 = vmax.f32 %v870_v0, 0.0  ;;  %v855_v3 = vadd.f32 %v1748_v52, %v819_v1  ;;  %v687_v4 = vpop.f32.mrf.mxu2 }
  0xc6   : > { %v776_v5 = vpop.f32.mrf.mxu3 }
  0xc7   : > { %v934_v6 = vpack.c.bf16 %v902_v2, %v902_v2  ;;  %v887_v7 = vmax.f32 %v855_v3, 0.0  ;;  %v777_v8 = vadd.f32 %v776_v5, %v687_v4  ;;  %v650_v9 = vpop.f32.mrf.mxu0 }
  0xc8   : > { %v739_v10 = vpop.f32.mrf.mxu1 }
  0xc9   : > { %967 = vst.msk [vmem:[%s1755_s28 + $0x40] sm:$0xf] %vm950_vm0, %v934_v6  ;;  %v919_v11 = vpack.c.bf16 %v887_v7, %v887_v7  ;;  %v835_v12 = vmul.f32 %v1743_v49, %v777_v8  ;;  %v740_v13 = vadd.f32 %v739_v10, %v650_v9 }
  0xcb   : > { %952 = vst.msk [vmem:[%s1755_s28 + $0x4] sm:$0xf] %vm950_vm0, %v919_v11  ;;  %v871_v14 = vadd.f32 %v1748_v52, %v835_v12  ;;  %v820_v15 = vmul.f32 %v1743_v49, %v740_v13 }
  0xcd   : > { %v903_v16 = vmax.f32 %v871_v14, 0.0  ;;  %v856_v17 = vadd.f32 %v1748_v52, %v820_v15  ;;  %v690_v18 = vpop.f32.mrf.mxu2 }
  0xce   : > { %v779_v19 = vpop.f32.mrf.mxu3 }
  0xcf   : > { %v935_v20 = vpack.c.bf16 %v903_v16, %v903_v16  ;;  %v888_v21 = vmax.f32 %v856_v17, 0.0  ;;  %v780_v22 = vadd.f32 %v779_v19, %v690_v18  ;;  %v652_v23 = vpop.f32.mrf.mxu0 }
  0xd0   : > { %v741_v24 = vpop.f32.mrf.mxu1 }
  0xd1   : > { %968 = vst.msk [vmem:[%s1755_s28 + $0x44] sm:$0xf] %vm950_vm0, %v935_v20  ;;  %v920_v25 = vpack.c.bf16 %v888_v21, %v888_v21  ;;  %v836_v26 = vmul.f32 %v1743_v49, %v780_v22  ;;  %v742_v27 = vadd.f32 %v741_v24, %v652_v23 }
  0xd3   : > { %953 = vst.msk [vmem:[%s1755_s28 + $0x8] sm:$0xf] %vm950_vm0, %v920_v25  ;;  %v872_v28 = vadd.f32 %v1748_v52, %v836_v26  ;;  %v821_v29 = vmul.f32 %v1743_v49, %v742_v27 }
  0xd5   : > { %v904_v30 = vmax.f32 %v872_v28, 0.0  ;;  %v857_v31 = vadd.f32 %v1748_v52, %v821_v29  ;;  %v692_v32 = vpop.f32.mrf.mxu2 }
  0xd6   : > { %v781_v33 = vpop.f32.mrf.mxu3 }
  0xd7   : > { %v936_v34 = vpack.c.bf16 %v904_v30, %v904_v30  ;;  %v889_v35 = vmax.f32 %v857_v31, 0.0  ;;  %v782_v36 = vadd.f32 %v781_v33, %v692_v32  ;;  %v655_v37 = vpop.f32.mrf.mxu0 }
  0xd8   : > { %v744_v38 = vpop.f32.mrf.mxu1 }
  0xd9   : > { %969 = vst.msk [vmem:[%s1755_s28 + $0x48] sm:$0xf] %vm950_vm0, %v936_v34  ;;  %v921_v39 = vpack.c.bf16 %v889_v35, %v889_v35  ;;  %v837_v40 = vmul.f32 %v1743_v49, %v782_v36  ;;  %v745_v41 = vadd.f32 %v744_v38, %v655_v37 }
  0xdb   : > { %954 = vst.msk [vmem:[%s1755_s28 + $0xc] sm:$0xf] %vm950_vm0, %v921_v39  ;;  %v873_v42 = vadd.f32 %v1748_v52, %v837_v40  ;;  %v822_v43 = vmul.f32 %v1743_v49, %v745_v41 }
  0xdd   : > { %v905_v44 = vmax.f32 %v873_v42, 0.0  ;;  %v858_v45 = vadd.f32 %v1748_v52, %v822_v43  ;;  %v695_v46 = vpop.f32.mrf.mxu2 }
  0xde   : > { %v784_v47 = vpop.f32.mrf.mxu3 }
  0xdf   : > { %v937_v48 = vpack.c.bf16 %v905_v44, %v905_v44  ;;  %v890_v50 = vmax.f32 %v858_v45, 0.0  ;;  %v785_v51 = vadd.f32 %v784_v47, %v695_v46  ;;  %v657_v53 = vpop.f32.mrf.mxu0 }
  0xe0   : > { %v746_v54 = vpop.f32.mrf.mxu1 }
  0xe1   : > { %970 = vst.msk [vmem:[%s1755_s28 + $0x4c] sm:$0xf] %vm950_vm0, %v937_v48  ;;  %v922_v55 = vpack.c.bf16 %v890_v50, %v890_v50  ;;  %v838_v56 = vmul.f32 %v1743_v49, %v785_v51  ;;  %v747_v57 = vadd.f32 %v746_v54, %v657_v53 }
  0xe3   : > { %955 = vst.msk [vmem:[%s1755_s28 + $0x10] sm:$0xf] %vm950_vm0, %v922_v55  ;;  %v874_v58 = vadd.f32 %v1748_v52, %v838_v56  ;;  %v823_v59 = vmul.f32 %v1743_v49, %v747_v57 }
  0xe5   : > { %v906_v60 = vmax.f32 %v874_v58, 0.0  ;;  %v859_v61 = vadd.f32 %v1748_v52, %v823_v59  ;;  %v697_v62 = vpop.f32.mrf.mxu2 }
  0xe6   : > { %v786_v63 = vpop.f32.mrf.mxu3 }
  0xe7   : > { %v938_v0 = vpack.c.bf16 %v906_v60, %v906_v60  ;;  %v891_v1 = vmax.f32 %v859_v61, 0.0  ;;  %v787_v2 = vadd.f32 %v786_v63, %v697_v62  ;;  %v660_v3 = vpop.f32.mrf.mxu0 }
  0xe8   : > { %v749_v4 = vpop.f32.mrf.mxu1 }
  0xe9   : > { %971 = vst.msk [vmem:[%s1755_s28 + $0x50] sm:$0xf] %vm950_vm0, %v938_v0  ;;  %v923_v5 = vpack.c.bf16 %v891_v1, %v891_v1  ;;  %v839_v6 = vmul.f32 %v1743_v49, %v787_v2  ;;  %v750_v7 = vadd.f32 %v749_v4, %v660_v3 }
  0xeb   : > { %956 = vst.msk [vmem:[%s1755_s28 + $0x14] sm:$0xf] %vm950_vm0, %v923_v5  ;;  %v875_v8 = vadd.f32 %v1748_v52, %v839_v6  ;;  %v824_v9 = vmul.f32 %v1743_v49, %v750_v7 }
  0xed   : > { %v907_v10 = vmax.f32 %v875_v8, 0.0  ;;  %v860_v11 = vadd.f32 %v1748_v52, %v824_v9  ;;  %v700_v12 = vpop.f32.mrf.mxu2 }
  0xee   : > { %v789_v13 = vpop.f32.mrf.mxu3 }
  0xef   : > { %v939_v14 = vpack.c.bf16 %v907_v10, %v907_v10  ;;  %v892_v15 = vmax.f32 %v860_v11, 0.0  ;;  %v790_v16 = vadd.f32 %v789_v13, %v700_v12  ;;  %v662_v17 = vpop.f32.mrf.mxu0 }
  0xf0   : > { %v751_v18 = vpop.f32.mrf.mxu1 }
  0xf1   : > { %972 = vst.msk [vmem:[%s1755_s28 + $0x54] sm:$0xf] %vm950_vm0, %v939_v14  ;;  %v924_v19 = vpack.c.bf16 %v892_v15, %v892_v15  ;;  %v840_v20 = vmul.f32 %v1743_v49, %v790_v16  ;;  %v752_v21 = vadd.f32 %v751_v18, %v662_v17 }
  0xf3   : > { %957 = vst.msk [vmem:[%s1755_s28 + $0x18] sm:$0xf] %vm950_vm0, %v924_v19  ;;  %v876_v22 = vadd.f32 %v1748_v52, %v840_v20  ;;  %v825_v23 = vmul.f32 %v1743_v49, %v752_v21 }
  0xf5   : > { %v908_v24 = vmax.f32 %v876_v22, 0.0  ;;  %v861_v25 = vadd.f32 %v1748_v52, %v825_v23  ;;  %v702_v26 = vpop.f32.mrf.mxu2 }
  0xf6   : > { %v791_v27 = vpop.f32.mrf.mxu3 }
  0xf7   : > { %v940_v28 = vpack.c.bf16 %v908_v24, %v908_v24  ;;  %v893_v29 = vmax.f32 %v861_v25, 0.0  ;;  %v792_v30 = vadd.f32 %v791_v27, %v702_v26  ;;  %v665_v31 = vpop.f32.mrf.mxu0 }
  0xf8   : > { %v754_v32 = vpop.f32.mrf.mxu1 }
  0xf9   : > { %973 = vst.msk [vmem:[%s1755_s28 + $0x58] sm:$0xf] %vm950_vm0, %v940_v28  ;;  %v925_v33 = vpack.c.bf16 %v893_v29, %v893_v29  ;;  %v841_v34 = vmul.f32 %v1743_v49, %v792_v30  ;;  %v755_v35 = vadd.f32 %v754_v32, %v665_v31 }
  0xfb   : > { %958 = vst.msk [vmem:[%s1755_s28 + $0x1c] sm:$0xf] %vm950_vm0, %v925_v33  ;;  %v877_v36 = vadd.f32 %v1748_v52, %v841_v34  ;;  %v826_v37 = vmul.f32 %v1743_v49, %v755_v35 }
  0xfd   : > { %v909_v38 = vmax.f32 %v877_v36, 0.0  ;;  %v862_v39 = vadd.f32 %v1748_v52, %v826_v37  ;;  %v705_v40 = vpop.f32.mrf.mxu2 }
  0xfe   : > { %v794_v41 = vpop.f32.mrf.mxu3 }
  0xff   : > { %v941_v42 = vpack.c.bf16 %v909_v38, %v909_v38  ;;  %v894_v43 = vmax.f32 %v862_v39, 0.0  ;;  %v795_v44 = vadd.f32 %v794_v41, %v705_v40  ;;  %v667_v45 = vpop.f32.mrf.mxu0 }
 0x100   : > { %v756_v46 = vpop.f32.mrf.mxu1 }
 0x101   : > { %974 = vst.msk [vmem:[%s1755_s28 + $0x5c] sm:$0xf] %vm950_vm0, %v941_v42  ;;  %v926_v47 = vpack.c.bf16 %v894_v43, %v894_v43  ;;  %v842_v48 = vmul.f32 %v1743_v49, %v795_v44  ;;  %v757_v50 = vadd.f32 %v756_v46, %v667_v45 }
 0x103   : > { %959 = vst.msk [vmem:[%s1755_s28 + $0x20] sm:$0xf] %vm950_vm0, %v926_v47  ;;  %v878_v51 = vadd.f32 %v1748_v52, %v842_v48  ;;  %v827_v53 = vmul.f32 %v1743_v49, %v757_v50 }
 0x105   : > { %v910_v54 = vmax.f32 %v878_v51, 0.0  ;;  %v863_v55 = vadd.f32 %v1748_v52, %v827_v53  ;;  %v707_v56 = vpop.f32.mrf.mxu2 }
 0x106   : > { %v796_v57 = vpop.f32.mrf.mxu3 }
 0x107   : > { %v942_v58 = vpack.c.bf16 %v910_v54, %v910_v54  ;;  %v895_v59 = vmax.f32 %v863_v55, 0.0  ;;  %v797_v60 = vadd.f32 %v796_v57, %v707_v56  ;;  %v670_v61 = vpop.f32.mrf.mxu0 }
 0x108   : > { %v759_v62 = vpop.f32.mrf.mxu1 }
 0x109   : > { %975 = vst.msk [vmem:[%s1755_s28 + $0x60] sm:$0xf] %vm950_vm0, %v942_v58  ;;  %v927_v63 = vpack.c.bf16 %v895_v59, %v895_v59  ;;  %v843_v0 = vmul.f32 %v1743_v49, %v797_v60  ;;  %v760_v1 = vadd.f32 %v759_v62, %v670_v61 }
 0x10b   : > { %960 = vst.msk [vmem:[%s1755_s28 + $0x24] sm:$0xf] %vm950_vm0, %v927_v63  ;;  %v879_v2 = vadd.f32 %v1748_v52, %v843_v0  ;;  %v828_v3 = vmul.f32 %v1743_v49, %v760_v1 }
 0x10d   : > { %v911_v4 = vmax.f32 %v879_v2, 0.0  ;;  %v864_v5 = vadd.f32 %v1748_v52, %v828_v3  ;;  %v710_v6 = vpop.f32.mrf.mxu2 }
 0x10e   : > { %v799_v7 = vpop.f32.mrf.mxu3 }
 0x10f   : > { %v943_v8 = vpack.c.bf16 %v911_v4, %v911_v4  ;;  %v896_v9 = vmax.f32 %v864_v5, 0.0  ;;  %v800_v10 = vadd.f32 %v799_v7, %v710_v6  ;;  %v672_v11 = vpop.f32.mrf.mxu0 }
 0x110   : > { %v761_v12 = vpop.f32.mrf.mxu1 }
 0x111   : > { %976 = vst.msk [vmem:[%s1755_s28 + $0x64] sm:$0xf] %vm950_vm0, %v943_v8  ;;  %v928_v13 = vpack.c.bf16 %v896_v9, %v896_v9  ;;  %v844_v14 = vmul.f32 %v1743_v49, %v800_v10  ;;  %v762_v15 = vadd.f32 %v761_v12, %v672_v11 }
 0x113   : > { %961 = vst.msk [vmem:[%s1755_s28 + $0x28] sm:$0xf] %vm950_vm0, %v928_v13  ;;  %v880_v16 = vadd.f32 %v1748_v52, %v844_v14  ;;  %v829_v17 = vmul.f32 %v1743_v49, %v762_v15 }
 0x115   : > { %v912_v18 = vmax.f32 %v880_v16, 0.0  ;;  %v865_v19 = vadd.f32 %v1748_v52, %v829_v17  ;;  %v712_v20 = vpop.f32.mrf.mxu2 }
 0x116   : > { %v801_v21 = vpop.f32.mrf.mxu3 }
 0x117   : > { %v944_v22 = vpack.c.bf16 %v912_v18, %v912_v18  ;;  %v897_v23 = vmax.f32 %v865_v19, 0.0  ;;  %v802_v24 = vadd.f32 %v801_v21, %v712_v20  ;;  %v675_v25 = vpop.f32.mrf.mxu0 }
 0x118   : > { %v764_v26 = vpop.f32.mrf.mxu1 }
 0x119   : > { %977 = vst.msk [vmem:[%s1755_s28 + $0x68] sm:$0xf] %vm950_vm0, %v944_v22  ;;  %v929_v27 = vpack.c.bf16 %v897_v23, %v897_v23  ;;  %v845_v28 = vmul.f32 %v1743_v49, %v802_v24  ;;  %v765_v29 = vadd.f32 %v764_v26, %v675_v25 }
 0x11b   : > { %962 = vst.msk [vmem:[%s1755_s28 + $0x2c] sm:$0xf] %vm950_vm0, %v929_v27  ;;  %v881_v30 = vadd.f32 %v1748_v52, %v845_v28  ;;  %v830_v31 = vmul.f32 %v1743_v49, %v765_v29 }
 0x11d   : > { %v913_v32 = vmax.f32 %v881_v30, 0.0  ;;  %v866_v33 = vadd.f32 %v1748_v52, %v830_v31  ;;  %v715_v34 = vpop.f32.mrf.mxu2 }
 0x11e   : > { %v804_v35 = vpop.f32.mrf.mxu3 }
 0x11f   : > { %v945_v36 = vpack.c.bf16 %v913_v32, %v913_v32  ;;  %v898_v37 = vmax.f32 %v866_v33, 0.0  ;;  %v805_v38 = vadd.f32 %v804_v35, %v715_v34  ;;  %v677_v39 = vpop.f32.mrf.mxu0 }
 0x120   : > { %v766_v40 = vpop.f32.mrf.mxu1 }
 0x121   : > { %978 = vst.msk [vmem:[%s1755_s28 + $0x6c] sm:$0xf] %vm950_vm0, %v945_v36  ;;  %v930_v41 = vpack.c.bf16 %v898_v37, %v898_v37  ;;  %v846_v42 = vmul.f32 %v1743_v49, %v805_v38  ;;  %v767_v43 = vadd.f32 %v766_v40, %v677_v39 }
 0x123   : > { %963 = vst.msk [vmem:[%s1755_s28 + $0x30] sm:$0xf] %vm950_vm0, %v930_v41  ;;  %v882_v44 = vadd.f32 %v1748_v52, %v846_v42  ;;  %v831_v45 = vmul.f32 %v1743_v49, %v767_v43 }
 0x125   : > { %v914_v46 = vmax.f32 %v882_v44, 0.0  ;;  %v867_v47 = vadd.f32 %v1748_v52, %v831_v45  ;;  %v717_v48 = vpop.f32.mrf.mxu2 }
 0x126   : > { %v806_v50 = vpop.f32.mrf.mxu3 }
 0x127   : > { %v946_v51 = vpack.c.bf16 %v914_v46, %v914_v46  ;;  %v899_v53 = vmax.f32 %v867_v47, 0.0  ;;  %v807_v54 = vadd.f32 %v806_v50, %v717_v48  ;;  %v680_v55 = vpop.f32.mrf.mxu0 }
 0x128   : > { %v769_v56 = vpop.f32.mrf.mxu1 }
 0x129   : > { %979 = vst.msk [vmem:[%s1755_s28 + $0x70] sm:$0xf] %vm950_vm0, %v946_v51  ;;  %v931_v57 = vpack.c.bf16 %v899_v53, %v899_v53  ;;  %v847_v58 = vmul.f32 %v1743_v49, %v807_v54  ;;  %v770_v59 = vadd.f32 %v769_v56, %v680_v55 }
 0x12b   : > { %964 = vst.msk [vmem:[%s1755_s28 + $0x34] sm:$0xf] %vm950_vm0, %v931_v57  ;;  %v883_v60 = vadd.f32 %v1748_v52, %v847_v58  ;;  %v832_v61 = vmul.f32 %v1743_v49, %v770_v59 }
 0x12d   : > { %v915_v62 = vmax.f32 %v883_v60, 0.0  ;;  %v868_v63 = vadd.f32 %v1748_v52, %v832_v61  ;;  %v720_v0 = vpop.f32.mrf.mxu2 }
 0x12e   : > { %v809_v1 = vpop.f32.mrf.mxu3 }
 0x12f   : > { %v947_v2 = vpack.c.bf16 %v915_v62, %v915_v62  ;;  %v900_v3 = vmax.f32 %v868_v63, 0.0  ;;  %v810_v4 = vadd.f32 %v809_v1, %v720_v0  ;;  %v682_v5 = vpop.f32.mrf.mxu0 }
 0x130   : > { %v771_v6 = vpop.f32.mrf.mxu1 }
 0x131   : > { %980 = vst.msk [vmem:[%s1755_s28 + $0x74] sm:$0xf] %vm950_vm0, %v947_v2  ;;  %v932_v7 = vpack.c.bf16 %v900_v3, %v900_v3  ;;  %v848_v8 = vmul.f32 %v1743_v49, %v810_v4  ;;  %v772_v9 = vadd.f32 %v771_v6, %v682_v5 }
 0x133   : > { %965 = vst.msk [vmem:[%s1755_s28 + $0x38] sm:$0xf] %vm950_vm0, %v932_v7  ;;  %v884_v10 = vadd.f32 %v1748_v52, %v848_v8  ;;  %v833_v11 = vmul.f32 %v1743_v49, %v772_v9 }
 0x135   : > { %v916_v12 = vmax.f32 %v884_v10, 0.0  ;;  %v869_v13 = vadd.f32 %v1748_v52, %v833_v11  ;;  %v722_v14 = vpop.f32.mrf.mxu2 }
 0x136   : > { %v811_v15 = vpop.f32.mrf.mxu3 }
 0x137   : > { %v948_v16 = vpack.c.bf16 %v916_v12, %v916_v12  ;;  %v901_v17 = vmax.f32 %v869_v13, 0.0  ;;  %v812_v18 = vadd.f32 %v811_v15, %v722_v14 }
 0x139   : > { %981 = vst.msk [vmem:[%s1755_s28 + $0x78] sm:$0xf] %vm950_vm0, %v948_v16  ;;  %v933_v19 = vpack.c.bf16 %v901_v17, %v901_v17  ;;  %v849_v20 = vmul.f32 %v1743_v49, %v812_v18 }
 0x13b   : > { %966 = vst.msk [vmem:[%s1755_s28 + $0x3c] sm:$0xf] %vm950_vm0, %v933_v19  ;;  %v885_v21 = vadd.f32 %v1748_v52, %v849_v20 }
 0x13d   : > { %v917_v22 = vmax.f32 %v885_v21, 0.0 }
 0x13f   : > { %v949_v23 = vpack.c.bf16 %v917_v22, %v917_v22 }
 0x141   : > { %982 = vst.msk [vmem:[%s1755_s28 + $0x7c] sm:$0xf] %vm950_vm0, %v949_v23 }
 0x142 PF: > { %s17_s20 = sadd.s32 1, %s1531_s20   ;;  %s1908_s15 = smov %s1515_s16 }
 0x143   : > { %p14_p0 = scmp.ge.s32.totalorder %s17_s20, 6   ;;  %s1909_s16 = smov %s1519_s17 }
 0x144   : > { %s1910_s17 = smov %s1609_s27  ;;  %s1911_s18 = smov %s1527_s19 }
 0x145   : > { %s1912_s19 = smov %s1914_s22  ;;  %16 = sbr.rel (!%p14_p0) target bundleno = 4 (0x4), region = 85 }
 0x14a   :  { %1011 = vsyncpa [#allocation3], 1 }
 0x14b   :  { %1013 = vsyncpa [#allocation3 + $0x1], 1 }

</bundles_post_ra>
